<compile_context>
chip_gen: v6e
topology: v6e:2x2x1
jax: 0.10.0
libtpu: 0.0.40
codegen_flags: <defaults>
</compile_context>

<pallas_src>
import functools

import jax
import jax.numpy as jnp
from jax.experimental import pallas as pl
from jax.experimental.pallas import tpu as pltpu


def _round_up(n, m):
    return ((n + m - 1) // m) * m


def _vmem_capacity_bytes():
    """Physical VMEM per core; conservative fallback (v7x = 64 MiB) if unknown."""
    try:
        info = pltpu.get_tpu_info()
        cap = getattr(info, "vmem_capacity_bytes", None)
        if cap:
            return int(cap)
    except Exception:
        pass
    return 64 * 1024 * 1024


def _encoder_kernel(*refs, n_hidden, embed_dim, fuse_std):
    """refs = (x, [w_i, b_i]*n_hidden, w_heads, b_heads, out_slab)."""
    x_ref = refs[0]
    out_ref = refs[-1]

    h = x_ref[...]
    idx = 1
    for _ in range(n_hidden):
        w_ref, b_ref = refs[idx], refs[idx + 1]
        idx += 2
        # Linear (MXU, f32 accumulate) + bias + ReLU (VPU).
        h = jnp.dot(h.astype(w_ref.dtype), w_ref[...],
                    preferred_element_type=jnp.float32)
        h = jnp.maximum(h + b_ref[...], 0.0)

    # Fused heads: one matmul producing a lane-dense (multiple-of-128) slab.
    #   cols [0, E)     -> mu
    #   cols [E, 2E)    -> logvar
    #   cols [2E, 3E)   -> 0.5*logvar (only when fuse_std; exp() -> std)
    #   remaining cols  -> zero padding
    wh_ref, bh_ref = refs[idx], refs[idx + 1]
    head = jnp.dot(h.astype(wh_ref.dtype), wh_ref[...],
                   preferred_element_type=jnp.float32) + bh_ref[...]

    if fuse_std:
        lane = jax.lax.broadcasted_iota(jnp.int32, head.shape, dimension=1)
        is_std = (lane >= 2 * embed_dim) & (lane < 3 * embed_dim)
        # 0.5 is already baked into the std columns of wh/bh at pack time.
        head = jnp.where(is_std, jnp.exp(head), head)

    out_ref[...] = head.astype(out_ref.dtype)


def encoder_forward(x, params, *, block_b=8192,
                    compute_dtype=jnp.float32, out_dtype=None):
    """Run the TVAE Encoder forward. Returns (mu, std, logvar).

    params: [(w, b) for each hidden layer] + [(w_mu, b_mu), (w_logvar, b_logvar)]
    Weights are (in_dim, out_dim); biases are (1, out_dim).

    compute_dtype: bf16 recommended on v6e/v7x (f32 MXU accumulation is kept).
    out_dtype:     dtype of the HBM output slab (bf16 halves writeback traffic
                   on this mem-bound kernel); defaults to compute_dtype.
    """
    if out_dtype is None:
        out_dtype = compute_dtype
    *hidden, (wmu, bmu), (wlv, blv) = params
    n_hidden = len(hidden)
    B, D = x.shape
    E = wmu.shape[1]
    H_last = wmu.shape[0]

    # Only duplicate logvar into std lanes if it does not widen the slab.
    slab2 = _round_up(2 * E, 128)
    slab3 = _round_up(3 * E, 128)
    fuse_std = (slab3 == slab2)
    SLAB = slab3 if fuse_std else slab2

    # ---- pack fused head weights/biases into a lane-padded slab ------------
    wh = jnp.zeros((H_last, SLAB), compute_dtype)
    wh = wh.at[:, 0 * E:1 * E].set(wmu.astype(compute_dtype))
    wh = wh.at[:, 1 * E:2 * E].set(wlv.astype(compute_dtype))
    bh = jnp.zeros((1, SLAB), jnp.float32)
    bh = bh.at[:, 0 * E:1 * E].set(bmu.astype(jnp.float32))
    bh = bh.at[:, 1 * E:2 * E].set(blv.astype(jnp.float32))
    if fuse_std:
        # Bake the 0.5 of exp(0.5*logvar) into the std columns.
        wh = wh.at[:, 2 * E:3 * E].set((0.5 * wlv).astype(compute_dtype))
        bh = bh.at[:, 2 * E:3 * E].set((0.5 * blv).astype(jnp.float32))

    # ---- resident weight footprint (double-buffered by the auto pipeline) --
    x_item = jnp.dtype(compute_dtype).itemsize
    out_item = jnp.dtype(out_dtype).itemsize
    weight_bytes = 0
    for (w, b) in hidden:
        wi, wo = w.shape
        weight_bytes += wi * wo * x_item + wo * 4
    weight_bytes += H_last * SLAB * x_item + SLAB * 4

    # ---- VMEM-budget-derived batch tile -------------------------------------
    vmem_cap = _vmem_capacity_bytes()           # 128 MiB (v5e/v6e) / 64 MiB (v7x)
    budget = (3 * vmem_cap) // 4                # ~96 MiB / ~48 MiB
    avail = budget - 2 * weight_bytes - (2 << 20)   # weights double-buffered + slack
    per_row = 2 * (D * x_item + SLAB * out_item)    # x + out tiles, double-buffered
    TB_budget = max(8, (max(avail, per_row * 8) // per_row) // 8 * 8)

    B8 = _round_up(B, 8)
    TB = min(TB_budget, block_b, B8)
    if B8 >= 16:
        # Keep >= 2 grid steps so v7x's two TensorCores both get work
        # ("parallel" grid axis); costs only ~0.35 us of step overhead elsewhere.
        TB = min(TB, _round_up((B8 + 1) // 2, 8))
    TB = max(TB, 8)

    B_pad = _round_up(B, TB)
    if B_pad != B:
        x = jnp.pad(x, ((0, B_pad - B), (0, 0)))
    x = x.astype(compute_dtype)

    # ---- flat operand list: x, (w, b)*n_hidden, w_heads, b_heads -----------
    operands = [x]
    in_specs = [pl.BlockSpec((TB, D), lambda i: (i, 0))]      # streamed per tile
    const = lambda i: (0, 0)                                   # weights resident
    flops = 0
    for (w, b) in hidden:
        wi, wo = w.shape
        operands += [w.astype(compute_dtype), b.astype(jnp.float32)]
        in_specs += [pl.BlockSpec((wi, wo), const),
                     pl.BlockSpec((1, wo), const)]
        flops += 2 * B_pad * wi * wo
    operands += [wh, bh]
    in_specs += [pl.BlockSpec((H_last, SLAB), const),
                 pl.BlockSpec((1, SLAB), const)]
    flops += 2 * B_pad * H_last * SLAB

    cost = pl.CostEstimate(
        flops=flops,
        transcendentals=(B_pad * SLAB) if fuse_std else 0,
        bytes_accessed=(B_pad * D * x_item + weight_bytes
                        + B_pad * SLAB * out_item),
    )

    out = pl.pallas_call(
        functools.partial(_encoder_kernel, n_hidden=n_hidden,
                          embed_dim=E, fuse_std=fuse_std),
        out_shape=jax.ShapeDtypeStruct((B_pad, SLAB), out_dtype),
        grid=(B_pad // TB,),
        in_specs=in_specs,
        out_specs=pl.BlockSpec((TB, SLAB), lambda i: (i, 0)),
        compiler_params=pltpu.CompilerParams(
            dimension_semantics=("parallel",),   # shard batch tiles across TCs
            vmem_limit_bytes=int(budget),
        ),
        cost_estimate=cost,
    )(*operands)

    # NOTE: consume these slices (or the raw slab) inside the same jit as the
    # downstream ops so XLA fuses them and the slab is not re-read from HBM.
    mu = out[:B, 0 * E:1 * E]
    logvar = out[:B, 1 * E:2 * E]
    if fuse_std:
        std = out[:B, 2 * E:3 * E]
    else:
        std = jnp.exp(0.5 * logvar.astype(jnp.float32)).astype(out_dtype)
    return mu, std, logvar


def init_params(key, data_dim, compress_dims, embedding_dim):
    """Deterministic parameter init (weights as (in, out), biases as (1, out))."""
    dims = [data_dim] + list(compress_dims)
    keys = jax.random.split(key, 2 * (len(compress_dims) + 2))
    params = []
    ki = 0
    for i in range(len(compress_dims)):
        fan_in, fan_out = dims[i], dims[i + 1]
        w = jax.random.normal(keys[ki], (fan_in, fan_out), jnp.float32) * 0.1
        b = jax.random.normal(keys[ki + 1], (1, fan_out), jnp.float32) * 0.1
        params.append((w, b))
        ki += 2
    last = dims[-1]
    for _ in range(2):  # fc1 (mu), fc2 (logvar)
        w = jax.random.normal(keys[ki], (last, embedding_dim), jnp.float32) * 0.1
        b = jax.random.normal(keys[ki + 1], (1, embedding_dim), jnp.float32) * 0.1
        params.append((w, b))
        ki += 2
    return params


def encoder_reference(x, params):
    """Pure-JAX reference for correctness checking."""
    *hidden, (wmu, bmu), (wlv, blv) = params
    h = x
    for w, b in hidden:
        h = jnp.maximum(h @ w + b, 0.0)
    mu = h @ wmu + bmu
    lv = h @ wlv + blv
    return mu, jnp.exp(0.5 * lv), lv


if __name__ == "__main__":
    data_dim = 32
    compress_dims = (64, 32)
    embedding_dim = 16
    batch = 8

    key = jax.random.PRNGKey(0)
    x_key, p_key = jax.random.split(key)
    x = jax.random.normal(x_key, (batch, data_dim), jnp.float32)
    params = init_params(p_key, data_dim, compress_dims, embedding_dim)

    mu_r, std_r, logvar_r = encoder_reference(x, params)

    # Exact-precision path (f32 streaming + f32 output): tight check.
    mu, std, logvar = encoder_forward(x, params, compute_dtype=jnp.float32,
                                      out_dtype=jnp.float32)
    jax.block_until_ready((mu, std, logvar))
    assert jnp.allclose(mu, mu_r, atol=1e-5, rtol=1e-5)
    assert jnp.allclose(std, std_r, atol=1e-5, rtol=1e-5)
    assert jnp.allclose(logvar, logvar_r, atol=1e-5, rtol=1e-5)

    # Fast path (bf16 streaming + bf16 output slab, f32 MXU accumulate):
    # looser tolerance, as documented.
    mu_b, std_b, logvar_b = encoder_forward(x, params,
                                            compute_dtype=jnp.bfloat16,
                                            out_dtype=jnp.bfloat16)
    jax.block_until_ready((mu_b, std_b, logvar_b))
    assert jnp.allclose(mu_b.astype(jnp.float32), mu_r, atol=1e-1, rtol=1e-1)
    assert jnp.allclose(std_b.astype(jnp.float32), std_r, atol=1e-1, rtol=1e-1)
    assert jnp.allclose(logvar_b.astype(jnp.float32), logvar_r, atol=1e-1, rtol=1e-1)

    print("KERNEL_OK")
</pallas_src>

<mosaic_0001>
module attributes {stable_mosaic.version = 11 : i64} {
  func.func @_encoder_kernel(%arg0: i32, %arg1: memref<8x32xf32, #tpu.memory_space<vmem>>, %arg2: memref<32x64xf32, #tpu.memory_space<vmem>>, %arg3: memref<1x64xf32, #tpu.memory_space<vmem>>, %arg4: memref<64x32xf32, #tpu.memory_space<vmem>>, %arg5: memref<1x32xf32, #tpu.memory_space<vmem>>, %arg6: memref<32x128xf32, #tpu.memory_space<vmem>>, %arg7: memref<1x128xf32, #tpu.memory_space<vmem>>, %arg8: memref<8x128xf32, #tpu.memory_space<vmem>>) attributes {dimension_semantics = [#tpu.dimension_semantics<parallel>], iteration_bounds = array<i64: 1>, scalar_prefetch = 0 : i64, scratch_operands = 0 : i64, tpu.core_type = #tpu.core_type<tc>, window_params = [{transform_indices = @transform_0, window_bounds = array<i64: 8, 32>}, {pipeline_mode = #tpu.pipeline_mode<synchronous>, transform_indices = @transform_1, window_bounds = array<i64: 32, 64>}, {pipeline_mode = #tpu.pipeline_mode<synchronous>, transform_indices = @transform_2, window_bounds = array<i64: 1, 64>}, {pipeline_mode = #tpu.pipeline_mode<synchronous>, transform_indices = @transform_3, window_bounds = array<i64: 64, 32>}, {pipeline_mode = #tpu.pipeline_mode<synchronous>, transform_indices = @transform_4, window_bounds = array<i64: 1, 32>}, {pipeline_mode = #tpu.pipeline_mode<synchronous>, transform_indices = @transform_5, window_bounds = array<i64: 32, 128>}, {pipeline_mode = #tpu.pipeline_mode<synchronous>, transform_indices = @transform_6, window_bounds = array<i64: 1, 128>}, {transform_indices = @transform_7, window_bounds = array<i64: 8, 128>}]} {
    %c0 = arith.constant 0 : index
    %c0_0 = arith.constant 0 : index
    %0 = vector.load %arg1[%c0, %c0_0] : memref<8x32xf32, #tpu.memory_space<vmem>>, vector<8x32xf32>
    %c0_1 = arith.constant 0 : index
    %c0_2 = arith.constant 0 : index
    %1 = vector.load %arg2[%c0_1, %c0_2] : memref<32x64xf32, #tpu.memory_space<vmem>>, vector<32x64xf32>
    %cst = arith.constant dense<0.000000e+00> : vector<8x64xf32>
    %2 = tpu.matmul %0, %1, %cst {dimension_numbers = #tpu.dot_dimension_numbers<[1], [0], [0], [1], [0, 0, 1, 1], [], []>} : vector<8x32xf32>, vector<32x64xf32>, vector<8x64xf32> -> vector<8x64xf32>
    %c0_3 = arith.constant 0 : index
    %c0_4 = arith.constant 0 : index
    %3 = vector.load %arg3[%c0_3, %c0_4] : memref<1x64xf32, #tpu.memory_space<vmem>>, vector<1x64xf32>
    %4 = vector.broadcast %3 : vector<1x64xf32> to vector<8x64xf32>
    %5 = arith.addf %2, %4 : vector<8x64xf32>
    %cst_5 = arith.constant 0.000000e+00 : f32
    %6 = vector.broadcast %cst_5 : f32 to vector<8x64xf32>
    %7 = arith.maximumf %5, %6 : vector<8x64xf32>
    %c0_6 = arith.constant 0 : index
    %c0_7 = arith.constant 0 : index
    %8 = vector.load %arg4[%c0_6, %c0_7] : memref<64x32xf32, #tpu.memory_space<vmem>>, vector<64x32xf32>
    %cst_8 = arith.constant dense<0.000000e+00> : vector<8x32xf32>
    %9 = tpu.matmul %7, %8, %cst_8 {dimension_numbers = #tpu.dot_dimension_numbers<[1], [0], [0], [1], [0, 0, 1, 1], [], []>} : vector<8x64xf32>, vector<64x32xf32>, vector<8x32xf32> -> vector<8x32xf32>
    %c0_9 = arith.constant 0 : index
    %c0_10 = arith.constant 0 : index
    %10 = vector.load %arg5[%c0_9, %c0_10] : memref<1x32xf32, #tpu.memory_space<vmem>>, vector<1x32xf32>
    %11 = vector.broadcast %10 : vector<1x32xf32> to vector<8x32xf32>
    %12 = arith.addf %9, %11 : vector<8x32xf32>
    %cst_11 = arith.constant 0.000000e+00 : f32
    %13 = vector.broadcast %cst_11 : f32 to vector<8x32xf32>
    %14 = arith.maximumf %12, %13 : vector<8x32xf32>
    %c0_12 = arith.constant 0 : index
    %c0_13 = arith.constant 0 : index
    %15 = vector.load %arg6[%c0_12, %c0_13] : memref<32x128xf32, #tpu.memory_space<vmem>>, vector<32x128xf32>
    %cst_14 = arith.constant dense<0.000000e+00> : vector<8x128xf32>
    %16 = tpu.matmul %14, %15, %cst_14 {dimension_numbers = #tpu.dot_dimension_numbers<[1], [0], [0], [1], [0, 0, 1, 1], [], []>} : vector<8x32xf32>, vector<32x128xf32>, vector<8x128xf32> -> vector<8x128xf32>
    %c0_15 = arith.constant 0 : index
    %c0_16 = arith.constant 0 : index
    %17 = vector.load %arg7[%c0_15, %c0_16] : memref<1x128xf32, #tpu.memory_space<vmem>>, vector<1x128xf32>
    %18 = vector.broadcast %17 : vector<1x128xf32> to vector<8x128xf32>
    %19 = arith.addf %16, %18 : vector<8x128xf32>
    %20 = tpu.iota {dimensions = array<i32: 1>} : vector<8x128xi32>
    %c32_i32 = arith.constant 32 : i32
    %21 = vector.broadcast %c32_i32 : i32 to vector<8x128xi32>
    %22 = arith.cmpi sge, %20, %21 : vector<8x128xi32>
    %c48_i32 = arith.constant 48 : i32
    %23 = vector.broadcast %c48_i32 : i32 to vector<8x128xi32>
    %24 = arith.cmpi slt, %20, %23 : vector<8x128xi32>
    %25 = arith.andi %22, %24 : vector<8x128xi1>
    %26 = math.exp %19 : vector<8x128xf32>
    %27 = arith.select %25, %26, %19 : vector<8x128xi1>, vector<8x128xf32>
    %c0_17 = arith.constant 0 : index
    %c0_18 = arith.constant 0 : index
    %28 = vector.load %arg8[%c0_17, %c0_18] : memref<8x128xf32, #tpu.memory_space<vmem>>, vector<8x128xf32>
    tpu.vector_store %arg8[%c0_17, %c0_18], %27 {strides = array<i32>} : memref<8x128xf32, #tpu.memory_space<vmem>>, vector<8x128xf32>,
    return
  }
  func.func @transform_0(%arg0: i32) -> (i32, i32) {
    %c0_i32 = arith.constant 0 : i32
    %c0_i32_0 = arith.constant 0 : i32
    return %arg0, %c0_i32 : i32, i32
  }
  func.func @transform_1(%arg0: i32) -> (i32, i32) {
    %c0_i32 = arith.constant 0 : i32
    %c0_i32_0 = arith.constant 0 : i32
    %c0_i32_1 = arith.constant 0 : i32
    return %c0_i32, %c0_i32_0 : i32, i32
  }
  func.func @transform_2(%arg0: i32) -> (i32, i32) {
    %c0_i32 = arith.constant 0 : i32
    %c0_i32_0 = arith.constant 0 : i32
    %c0_i32_1 = arith.constant 0 : i32
    return %c0_i32, %c0_i32_0 : i32, i32
  }
  func.func @transform_3(%arg0: i32) -> (i32, i32) {
    %c0_i32 = arith.constant 0 : i32
    %c0_i32_0 = arith.constant 0 : i32
    %c0_i32_1 = arith.constant 0 : i32
    return %c0_i32, %c0_i32_0 : i32, i32
  }
  func.func @transform_4(%arg0: i32) -> (i32, i32) {
    %c0_i32 = arith.constant 0 : i32
    %c0_i32_0 = arith.constant 0 : i32
    %c0_i32_1 = arith.constant 0 : i32
    return %c0_i32, %c0_i32_0 : i32, i32
  }
  func.func @transform_5(%arg0: i32) -> (i32, i32) {
    %c0_i32 = arith.constant 0 : i32
    %c0_i32_0 = arith.constant 0 : i32
    %c0_i32_1 = arith.constant 0 : i32
    return %c0_i32, %c0_i32_0 : i32, i32
  }
  func.func @transform_6(%arg0: i32) -> (i32, i32) {
    %c0_i32 = arith.constant 0 : i32
    %c0_i32_0 = arith.constant 0 : i32
    %c0_i32_1 = arith.constant 0 : i32
    return %c0_i32, %c0_i32_0 : i32, i32
  }
  func.func @transform_7(%arg0: i32) -> (i32, i32) {
    %c0_i32 = arith.constant 0 : i32
    %c0_i32_0 = arith.constant 0 : i32
    return %arg0, %c0_i32 : i32, i32
  }
}

</mosaic_0001>

<bundles_post_ra>
// kernel: tpu_custom_call.1
= control target key start
LH: loop header
LB: loop body
LE: loop exit
PB: predicated region body
PF: predicated region fallthrough
CT: control target
= control target key end

     0   :  { %v404_v1 = vmov 0.0   ;;  %vm405_vm0 = vmmov 0   ;;  %s515_s0 = inlined_call_operand.vmem [shape: f32[8,32], index: 0, kind: input, shape index: {}]   ;;  %s516_s1 = inlined_call_operand.vmem [shape: f32[32,64], index: 1, kind: input, shape index: {}]   ;;  %s517_s2 = inlined_call_operand.vmem [shape: f32[1,64], index: 2, kind: input, shape index: {}]   ;;  %s518_s3 = inlined_call_operand.vmem [shape: f32[64,32], index: 3, kind: input, shape index: {}]   ;;  %s519_s4 = inlined_call_operand.vmem [shape: f32[1,32], index: 4, kind: input, shape index: {}]   ;;  %s520_s5 = inlined_call_operand.vmem [shape: f32[32,128], index: 5, kind: input, shape index: {}]   ;;  %s521_s6 = inlined_call_operand.vmem [shape: f32[1,128], index: 6, kind: input, shape index: {}]   ;;  %s522_s7 = inlined_call_operand.hbm [shape: f32[8,128], index: 7, kind: output, shape index: {}]  }
   0x1   :  { %v31_v0 = vld [vmem:[%s516_s1 + $0x18] sm:$0xff]  ;;  %336 = vmatprep.subr.mxu0 %v404_v1  ;;  %v30_v2 = vld [vmem:[%s516_s1 + $0x10] sm:$0xff]  ;;  %344 = vmatprep.mubr.msk.f32.mxu0 %vm405_vm0, %v404_v1  ;;  %v29_v5 = vld [vmem:[%s516_s1 + $0x8] sm:$0xff] }
   0x2   :  { %v121_v3 = vld [vmem:[%s518_s3 + $0x38] sm:$0xff]  ;;  %337 = vmatpush3.msra.mxu0 %v31_v0  ;;  %347 = vmatprep.subr.mxu1 %v404_v1  ;;  %v120_v4 = vld [vmem:[%s518_s3 + $0x30] sm:$0xff] }
   0x3   :  { %338 = vmatprep.subr.mxu0 %v404_v1  ;;  %348 = vmatpush3.msra.mxu1 %v121_v3 }
   0x4   :  { %12 = vsyncpa [#allocation3], 0  ;;  %339 = vmatpush3.msra.mxu0 %v30_v2  ;;  %349 = vmatprep.subr.mxu1 %v404_v1  ;;  %v119_v6 = vld [vmem:[%s518_s3 + $0x28] sm:$0xff]  ;;  %v28_v7 = vld [vmem:[%s516_s1] sm:$0xff]  ;;  %vm39_vm1 = vcmask 261120   ;;  %vm129_vm2 = vcmask 523264   ;;  %v288_v33 = vlaneseq }
   0x5   :  { %340 = vmatprep.subr.mxu0 %v404_v1  ;;  %350 = vmatpush3.msra.mxu1 %v120_v4  ;;  %v27_v8 = vld [vmem:[%s515_s0] sm:$0xff]  ;;  %v117_v10 = vld [vmem:[%s518_s3 + $0x18] sm:$0xff]  ;;  %v116_v11 = vld [vmem:[%s518_s3 + $0x10] sm:$0xff] }
   0x6   :  { %341 = vmatpush3.msra.mxu0 %v29_v5  ;;  %351 = vmatprep.subr.mxu1 %v404_v1  ;;  %v118_v9 = vld [vmem:[%s518_s3 + $0x20] sm:$0xff]  ;;  %v115_v12 = vld [vmem:[%s518_s3 + $0x8] sm:$0xff]  ;;  %v207_v14 = vld [vmem:[%s520_s5 + $0x18] sm:$0xff]  ;;  %v289_v34 = vand.u32 127, %v288_v33 }
   0x7   :  { %342 = vmatprep.subr.mxu0 %v404_v1  ;;  %352 = vmatpush3.msra.mxu1 %v119_v6  ;;  %v114_v13 = vld [vmem:[%s518_s3] sm:$0xff]  ;;  %v206_v20 = vld [vmem:[%s520_s5 + $0x10] sm:$0xff]  ;;  %v205_v21 = vld [vmem:[%s520_s5 + $0x8] sm:$0xff] }
   0x8   :  { %343 = vmatpush3.msra.mxu0 %v28_v7  ;;  %353 = vmatprep.subr.mxu1 %v404_v1  ;;  %v311_v15 = vld [vmem:[%s517_s2] ss:$0 sm:$0xff]  ;;  %vm290_vm3 = vcmp.ge.s32.totalorder %v289_v34, 32  ;;  %vm291_vm4 = vcmp.lt.s32.totalorder %v289_v34, 48 }
   0x9   :  { %345 = vmatmul.mubr.msk.f32.vlgmr.msra.gmra.mxu0 %vm39_vm1, %v27_v8  ;;  %354 = vmatpush3.msra.mxu1 %v118_v9  ;;  %v204_v22 = vld [vmem:[%s520_s5] sm:$0xff]  ;;  %vm292_vm5 = vmand %vm290_vm3, %vm291_vm4 }
   0xa   :  { %355 = vmatprep.subr.mxu1 %v404_v1  ;;  %363 = vmatprep.mubr.msk.f32.mxu1 %vm405_vm0, %v404_v1  ;;  %v313_v23 = vld [vmem:[%s519_s4] ss:$0 sm:$0xff]  ;;  %s406_s4 = smov [#allocation2]  }
   0xb   :  { %356 = vmatpush3.msra.mxu1 %v117_v10  ;;  %366 = vmatprep.subr.mxu0 %v404_v1  ;;  %v315_v28 = vld [vmem:[%s521_s6] ss:$0 sm:$0xff]  ;;  %s303_s5 = sshll.u32 %s406_s4, 4  ;;  %s304_s5 = int_to_ptr.vmem [resolvable:$true] %s303_s5 }
   0xc   :  { %357 = vmatprep.subr.mxu1 %v404_v1  ;;  %374 = vmatprep.mubr.msk.f32.mxu0 %vm405_vm0, %v404_v1  ;;  %s382_s14 = scalar_lea.vmem %s304_s5, 128  ;;  %p387_p1 = scmp.lt.s32.totalorder %s304_s5, %s304_s5 }
   0xd   :  { %358 = vmatpush3.msra.mxu1 %v116_v11  ;;  %367 = vmatpush3.msra.mxu0 %v207_v14  ;;  %p383_p0 = scmp.ne.s32.totalorder %s304_s5, %s382_s14  ;;  %p388_p2 = scmp.lt.s32.totalorder %s382_s14, %s382_s14 }
   0xe   :  { %359 = vmatprep.subr.mxu1 %v404_v1  ;;  %368 = vmatprep.subr.mxu0 %v404_v1 }
   0xf   :  { %360 = vmatpush3.msra.mxu1 %v115_v12  ;;  %369 = vmatpush3.msra.mxu0 %v206_v20  ;;  %p389_p3 = por %p388_p2, %p387_p1 }
  0x10   :  { %361 = vmatprep.subr.mxu1 %v404_v1  ;;  %370 = vmatprep.subr.mxu0 %v404_v1 }
  0x11   :  { %362 = vmatpush3.msra.mxu1 %v114_v13  ;;  %371 = vmatpush3.msra.mxu0 %v205_v21  ;;  %p390_p4 = pnand %p389_p3, %p383_p0 }
  0x12   :  { %372 = vmatprep.subr.mxu0 %v404_v1 }
  0x13   :  { %373 = vmatpush3.msra.mxu0 %v204_v22 }
  0xc9   :  { %v109_v16 = vpop.f32.mrf.mxu0 }
  0xca   :  { %v110_v17 = vadd.f32 %v311_v15, %v109_v16 }
  0xcb   :  { %v346_v18 = vpop.f32.mrf.mxu0 }
  0xcc   :  { %v113_v19 = vmax.f32 %v110_v17, 0.0 }
  0xce   :  { %364 = vmatmul.mubr.msk.f32.vlgmr.msra.gmra.mxu1 %vm129_vm2, %v113_v19 }
 0x18e   :  { %v199_v24 = vpop.f32.mrf.mxu1 }
 0x18f   :  { %v200_v25 = vadd.f32 %v313_v23, %v199_v24 }
 0x190   :  { %v365_v26 = vpop.f32.mrf.mxu1 }
 0x191   :  { %v203_v27 = vmax.f32 %v200_v25, 0.0 }
 0x193   :  { %375 = vmatmul.mubr.msk.f32.vlgmr.msra.gmra.mxu0 %vm39_vm1, %v203_v27 }
 0x253   :  { %v284_v29 = vpop.f32.mrf.mxu0 }
 0x254   :  { %v285_v30 = vadd.f32 %v315_v28, %v284_v29 }
 0x255   :  { %v376_v31 = vpop.f32.mrf.mxu0 }
 0x256   :  { %v293_v32 = vmul.f32 1.442695, %v285_v30 }
 0x258   :  { %380 = vpow2.f32 %v293_v32 }
 0x265   :  { %v381_v35 = vpop.eup %380 }
 0x266   :  { %v295_v36 = vsel %vm292_vm5, %v381_v35, %v285_v30 }
 0x267   :  { %296 = vst [vmem:[#allocation2] sm:$0xff] %v295_v36 }
 0x268   :  { %393 = shalt.err (!%p390_p4)
}
 0x269   :  { %306 = dma.vmem_to_hbm [thread:$0]  %s304_s5, 128, %s522_s7, [#allocation3]  }
 0x26a   :  { %402 = dma.done.wait [#allocation3], 128  }
 0x26b   :  { %403 = vsyncadd [#allocation3], 4294967168 }
 0x26c   :  { %310 = vsyncpa [#allocation3], 1 }

</bundles_post_ra>
